<compile_context>
chip_gen: v6e
topology: v6e:2x2x1
jax: 0.10.0
libtpu: 0.0.40
codegen_flags: <defaults>
</compile_context>

<pallas_src>
import functools

import numpy as np
import jax
import jax.numpy as jnp
from jax.experimental import pallas as pl
from jax.experimental.pallas import tpu as pltpu


def _hloss2_kernel(*refs, levels_scaled, inv_temperature, stabilize, has_x2):
    if has_x2:
        x1_ref, x2_ref, sums_ref = refs
    else:
        x1_ref, sums_ref = refs
        x2_ref = None

    num_levels = len(levels_scaled)
    j = pl.program_id(2)          # reduction over row-tiles (innermost, "arbitrary")

    @pl.when(j == 0)
    def _():
        sums_ref[...] = jnp.zeros_like(sums_ref)

    # Fused residual + cast, lane-dense (tile_rows, 128) f32 tile.
    x = x1_ref[0].astype(jnp.float32)
    if has_x2:
        x = x - x2_ref[0].astype(jnp.float32)
    # Single 1/T pre-scale; levels were pre-scaled by 1/T at trace time.
    x = x * inv_temperature

    # Distances, computed once and reused by both passes.
    d = [jnp.abs(x - lv) for lv in levels_scaled]

    if stabilize:
        # Shifted softmax: exponent (dmin - d_l) <= 0, exp never overflows.
        dmin = d[0]
        for l in range(1, num_levels):
            dmin = jnp.minimum(dmin, d[l])
        e = [jnp.exp(dmin - d_l) for d_l in d]
    else:
        # Valid when min_l |x - lv_l| / T stays well below the f32 exp underflow
        # bound (~85); skips the dmin pass and L subtracts.
        e = [jnp.exp(-d_l) for d_l in d]

    denom = e[0]
    for l in range(1, num_levels):
        denom = denom + e[l]

    # EUP approx reciprocal + one Newton-Raphson refinement (~1e-7 rel error)
    # instead of an exact f32 divide on the VALU.
    inv0 = pl.reciprocal(denom, approx=True)
    inv_denom = inv0 * (2.0 - denom * inv0)

    # Per-level row sums over this tile, applied as a single (L, 128) update to
    # the resident output block.
    tile_sums = jnp.concatenate(
        [jnp.sum(e[l] * inv_denom, axis=0, keepdims=True)
         for l in range(num_levels)],
        axis=0)                                            # (L, 128)
    sums_ref[0, 0, :, :] += tile_sums
    # TODO(synk): if a bundle dump ever shows vld/vst as the limiter (d/e lists
    # round-tripping through VMEM), strip-mine the tile with an unrolled
    # lax.fori_loop over <=64-row sub-chunks so the working set stays in vregs.


def _pick_tile_rows(rows, max_rows):
    """Largest legal row-tile for a (rows, 128) reshaped operand."""
    if rows <= max_rows:
        return rows                              # full extent is always legal
    start = max_rows - (max_rows % 8)
    for tr in range(start, 7, -8):               # largest mult-of-8 divisor <= cap
        if rows % tr == 0:
            return tr
    for tr in range(start + 8, rows, 8):         # smallest mult-of-8 divisor > cap
        if rows % tr == 0:                       # (still far better than untiled)
            return tr
    # TODO(synk): ragged `rows` with no multiple-of-8 divisor needs a pad+mask
    # path; an untiled block this large can exceed VMEM (v5e 16 MiB scoped,
    # v7x 64 MiB physical).
    return rows


def hloss2_pallas(x1, x2=None, *, levels, temperature=0.1, eps=1e-10,
                  max_tile_rows=512, num_row_splits=1, stabilize=True):
    """Differentiable entropy of the soft-quantized residual (HLoss2.forward)."""
    # Accept (B, N) or (B, N, 1) like the PyTorch module.
    if x1.ndim == 3 and x1.shape[-1] == 1:
        x1 = x1.reshape(x1.shape[0], x1.shape[1])
        if x2 is not None:
            x2 = x2.reshape(x2.shape[0], x2.shape[1])
    B, N = x1.shape
    assert N % 128 == 0, "N must be a multiple of 128 (lane width)"
    # TODO(synk): no masking path for ragged N (N not a multiple of 128).

    rows = N // 128
    n_split = int(num_row_splits)                # set 2 on v7x when B is small
    if n_split < 1 or rows % n_split != 0:
        n_split = 1
    rows_per_split = rows // n_split
    tile_rows = _pick_tile_rows(rows_per_split, max_tile_rows)
    steps = rows_per_split // tile_rows

    levels_np = np.asarray(jax.device_get(levels), dtype=np.float64).reshape(-1)
    L = int(levels_np.shape[0])
    inv_t = 1.0 / float(temperature)
    # TODO(synk): levels are baked as compile-time constants; if they ever become
    # a traced/learned parameter, move them back to an SMEM operand.
    levels_scaled = tuple(float(v) * inv_t for v in levels_np)

    has_x2 = x2 is not None
    x_spec = pl.BlockSpec((1, tile_rows, 128),
                          lambda s, b, j: (b, s * steps + j, 0))
    operands = [x1.reshape(B, rows, 128)]
    in_specs = [x_spec]
    if has_x2:
        operands.append(x2.reshape(B, rows, 128))
        in_specs.append(x_spec)

    kernel = functools.partial(
        _hloss2_kernel,
        levels_scaled=levels_scaled,
        inv_temperature=inv_t,
        stabilize=bool(stabilize),
        has_x2=has_x2,
    )

    partial_sums = pl.pallas_call(
        kernel,
        out_shape=jax.ShapeDtypeStruct((n_split, B, L, 128), jnp.float32),
        grid_spec=pltpu.PrefetchScalarGridSpec(
            num_scalar_prefetch=0,
            grid=(n_split, B, steps),
            in_specs=in_specs,
            out_specs=pl.BlockSpec((1, 1, L, 128),
                                   lambda s, b, j: (s, b, 0, 0)),
        ),
        compiler_params=pltpu.CompilerParams(
            dimension_semantics=("parallel", "parallel", "arbitrary"),
            vmem_limit_bytes=32 * 1024 * 1024,
        ),
    )(*operands)

    # Tiny finalization glue on an (n_split, B, L, 128) array.
    prob = jnp.sum(partial_sums, axis=(0, 3)) * (1.0 / N)            # (B, L)
    ent = -jnp.sum(prob * jnp.log2(prob + eps), axis=1)              # (B,)
    return jnp.mean(ent)


def hloss2_ref(r, levels, temperature=0.1, eps=1e-10):
    """Pure-JAX reference mirroring the PyTorch forward."""
    x_flat = r.reshape(-1, 1)
    dist = -jnp.abs(x_flat - levels[None, :]) / temperature
    sa = jax.nn.softmax(dist, axis=1).reshape(*r.shape, levels.shape[0])
    prob = jnp.mean(sa, axis=1)
    ent = -jnp.sum(prob * jnp.log2(prob + eps), axis=1)
    return jnp.mean(ent)


if __name__ == "__main__":
    key = jax.random.PRNGKey(0)
    k1, k2 = jax.random.split(key)

    B, N = 2, 256
    # deterministic "levels" parameter (quantization grid, as __init__ would hold)
    levels = jnp.linspace(-1.0, 1.0, 9, dtype=jnp.float32)

    x1 = jax.random.uniform(k1, (B, N), jnp.float32, minval=-1.0, maxval=1.0)
    x2 = 0.1 * jax.random.uniform(k2, (B, N), jnp.float32, minval=-1.0, maxval=1.0)

    out = hloss2_pallas(x1, x2, levels=levels, temperature=0.1, eps=1e-10)
    out = jax.block_until_ready(out)
    ref = hloss2_ref(x1 - x2, levels, temperature=0.1, eps=1e-10)
    assert jnp.allclose(out, ref, rtol=1e-5, atol=1e-5), (out, ref)

    # x2=None path (r = x1), exercised once for coverage.
    out1 = jax.block_until_ready(hloss2_pallas(x1, levels=levels))
    ref1 = hloss2_ref(x1, levels)
    assert jnp.allclose(out1, ref1, rtol=1e-5, atol=1e-5), (out1, ref1)

    print("KERNEL_OK")
</pallas_src>

<mosaic_0001>
module attributes {stable_mosaic.version = 11 : i64} {
  func.func @_hloss2_kernel(%arg0: i32, %arg1: i32, %arg2: i32, %arg3: memref<1x2x128xf32, #tpu.memory_space<vmem>>, %arg4: memref<1x2x128xf32, #tpu.memory_space<vmem>>, %arg5: memref<1x1x9x128xf32, #tpu.memory_space<vmem>>) attributes {dimension_semantics = [#tpu.dimension_semantics<parallel>, #tpu.dimension_semantics<parallel>, #tpu.dimension_semantics<arbitrary>], iteration_bounds = array<i64: 1, 2, 1>, scalar_prefetch = 0 : i64, scratch_operands = 0 : i64, tpu.core_type = #tpu.core_type<tc>, window_params = [{transform_indices = @transform_0, window_bounds = array<i64: 1, 2, 128>}, {transform_indices = @transform_1, window_bounds = array<i64: 1, 2, 128>}, {transform_indices = @transform_2, window_bounds = array<i64: 1, 1, 9, 128>}]} {
    %c0_i32 = arith.constant 0 : i32
    %0 = arith.cmpi eq, %arg2, %c0_i32 : i32
    %1 = arith.extui %0 : i1 to i32
    %c0_i32_0 = arith.constant 0 : i32
    %2 = arith.cmpi ne, %1, %c0_i32_0 : i32
    scf.if %2 {
      %cst_33 = arith.constant 0.000000e+00 : f32
      %110 = vector.broadcast %cst_33 : f32 to vector<1x1x9x128xf32>
      %c0_34 = arith.constant 0 : index
      %c0_35 = arith.constant 0 : index
      %c0_36 = arith.constant 0 : index
      %c0_37 = arith.constant 0 : index
      %111 = vector.load %arg5[%c0_34, %c0_35, %c0_36, %c0_37] : memref<1x1x9x128xf32, #tpu.memory_space<vmem>>, vector<1x1x9x128xf32>
      tpu.vector_store %arg5[%c0_34, %c0_35, %c0_36, %c0_37], %110 {strides = array<i32>} : memref<1x1x9x128xf32, #tpu.memory_space<vmem>>, vector<1x1x9x128xf32>,
    } else {
    }
    %c0 = arith.constant 0 : index
    %c0_1 = arith.constant 0 : index
    %c0_2 = arith.constant 0 : index
    %3 = vector.load %arg3[%c0, %c0_1, %c0_2] : memref<1x2x128xf32, #tpu.memory_space<vmem>>, vector<1x2x128xf32>
    %4 = vector.shape_cast %3 : vector<1x2x128xf32> to vector<2x128xf32>
    %c0_3 = arith.constant 0 : index
    %c0_4 = arith.constant 0 : index
    %c0_5 = arith.constant 0 : index
    %5 = vector.load %arg4[%c0_3, %c0_4, %c0_5] : memref<1x2x128xf32, #tpu.memory_space<vmem>>, vector<1x2x128xf32>
    %6 = vector.shape_cast %5 : vector<1x2x128xf32> to vector<2x128xf32>
    %7 = arith.subf %4, %6 : vector<2x128xf32>
    %cst = arith.constant 1.000000e+01 : f32
    %8 = vector.broadcast %cst : f32 to vector<2x128xf32>
    %9 = arith.mulf %7, %8 : vector<2x128xf32>
    %cst_6 = arith.constant -1.000000e+01 : f32
    %10 = vector.broadcast %cst_6 : f32 to vector<2x128xf32>
    %11 = arith.subf %9, %10 : vector<2x128xf32>
    %12 = math.absf %11 : vector<2x128xf32>
    %cst_7 = arith.constant -7.500000e+00 : f32
    %13 = vector.broadcast %cst_7 : f32 to vector<2x128xf32>
    %14 = arith.subf %9, %13 : vector<2x128xf32>
    %15 = math.absf %14 : vector<2x128xf32>
    %cst_8 = arith.constant -5.000000e+00 : f32
    %16 = vector.broadcast %cst_8 : f32 to vector<2x128xf32>
    %17 = arith.subf %9, %16 : vector<2x128xf32>
    %18 = math.absf %17 : vector<2x128xf32>
    %cst_9 = arith.constant -2.500000e+00 : f32
    %19 = vector.broadcast %cst_9 : f32 to vector<2x128xf32>
    %20 = arith.subf %9, %19 : vector<2x128xf32>
    %21 = math.absf %20 : vector<2x128xf32>
    %cst_10 = arith.constant 0.000000e+00 : f32
    %22 = vector.broadcast %cst_10 : f32 to vector<2x128xf32>
    %23 = arith.subf %9, %22 : vector<2x128xf32>
    %24 = math.absf %23 : vector<2x128xf32>
    %cst_11 = arith.constant 2.500000e+00 : f32
    %25 = vector.broadcast %cst_11 : f32 to vector<2x128xf32>
    %26 = arith.subf %9, %25 : vector<2x128xf32>
    %27 = math.absf %26 : vector<2x128xf32>
    %cst_12 = arith.constant 5.000000e+00 : f32
    %28 = vector.broadcast %cst_12 : f32 to vector<2x128xf32>
    %29 = arith.subf %9, %28 : vector<2x128xf32>
    %30 = math.absf %29 : vector<2x128xf32>
    %cst_13 = arith.constant 7.500000e+00 : f32
    %31 = vector.broadcast %cst_13 : f32 to vector<2x128xf32>
    %32 = arith.subf %9, %31 : vector<2x128xf32>
    %33 = math.absf %32 : vector<2x128xf32>
    %cst_14 = arith.constant 1.000000e+01 : f32
    %34 = vector.broadcast %cst_14 : f32 to vector<2x128xf32>
    %35 = arith.subf %9, %34 : vector<2x128xf32>
    %36 = math.absf %35 : vector<2x128xf32>
    %37 = arith.minimumf %12, %15 : vector<2x128xf32>
    %38 = arith.minimumf %37, %18 : vector<2x128xf32>
    %39 = arith.minimumf %38, %21 : vector<2x128xf32>
    %40 = arith.minimumf %39, %24 : vector<2x128xf32>
    %41 = arith.minimumf %40, %27 : vector<2x128xf32>
    %42 = arith.minimumf %41, %30 : vector<2x128xf32>
    %43 = arith.minimumf %42, %33 : vector<2x128xf32>
    %44 = arith.minimumf %43, %36 : vector<2x128xf32>
    %45 = arith.subf %44, %12 : vector<2x128xf32>
    %46 = math.exp %45 : vector<2x128xf32>
    %47 = arith.subf %44, %15 : vector<2x128xf32>
    %48 = math.exp %47 : vector<2x128xf32>
    %49 = arith.subf %44, %18 : vector<2x128xf32>
    %50 = math.exp %49 : vector<2x128xf32>
    %51 = arith.subf %44, %21 : vector<2x128xf32>
    %52 = math.exp %51 : vector<2x128xf32>
    %53 = arith.subf %44, %24 : vector<2x128xf32>
    %54 = math.exp %53 : vector<2x128xf32>
    %55 = arith.subf %44, %27 : vector<2x128xf32>
    %56 = math.exp %55 : vector<2x128xf32>
    %57 = arith.subf %44, %30 : vector<2x128xf32>
    %58 = math.exp %57 : vector<2x128xf32>
    %59 = arith.subf %44, %33 : vector<2x128xf32>
    %60 = math.exp %59 : vector<2x128xf32>
    %61 = arith.subf %44, %36 : vector<2x128xf32>
    %62 = math.exp %61 : vector<2x128xf32>
    %63 = arith.addf %46, %48 : vector<2x128xf32>
    %64 = arith.addf %63, %50 : vector<2x128xf32>
    %65 = arith.addf %64, %52 : vector<2x128xf32>
    %66 = arith.addf %65, %54 : vector<2x128xf32>
    %67 = arith.addf %66, %56 : vector<2x128xf32>
    %68 = arith.addf %67, %58 : vector<2x128xf32>
    %69 = arith.addf %68, %60 : vector<2x128xf32>
    %70 = arith.addf %69, %62 : vector<2x128xf32>
    %71 = tpu.reciprocal %70 {approx = true} : vector<2x128xf32> -> vector<2x128xf32>
    %72 = arith.mulf %70, %71 : vector<2x128xf32>
    %cst_15 = arith.constant 2.000000e+00 : f32
    %73 = vector.broadcast %cst_15 : f32 to vector<2x128xf32>
    %74 = arith.subf %73, %72 : vector<2x128xf32>
    %75 = arith.mulf %71, %74 : vector<2x128xf32>
    %76 = arith.mulf %46, %75 : vector<2x128xf32>
    %cst_16 = arith.constant dense<0.000000e+00> : vector<128xf32>
    %77 = vector.multi_reduction <add>, %76, %cst_16 [0] : vector<2x128xf32> to vector<128xf32>
    %78 = vector.shape_cast %77 : vector<128xf32> to vector<1x128xf32>
    %79 = arith.mulf %48, %75 : vector<2x128xf32>
    %cst_17 = arith.constant dense<0.000000e+00> : vector<128xf32>
    %80 = vector.multi_reduction <add>, %79, %cst_17 [0] : vector<2x128xf32> to vector<128xf32>
    %81 = vector.shape_cast %80 : vector<128xf32> to vector<1x128xf32>
    %82 = arith.mulf %50, %75 : vector<2x128xf32>
    %cst_18 = arith.constant dense<0.000000e+00> : vector<128xf32>
    %83 = vector.multi_reduction <add>, %82, %cst_18 [0] : vector<2x128xf32> to vector<128xf32>
    %84 = vector.shape_cast %83 : vector<128xf32> to vector<1x128xf32>
    %85 = arith.mulf %52, %75 : vector<2x128xf32>
    %cst_19 = arith.constant dense<0.000000e+00> : vector<128xf32>
    %86 = vector.multi_reduction <add>, %85, %cst_19 [0] : vector<2x128xf32> to vector<128xf32>
    %87 = vector.shape_cast %86 : vector<128xf32> to vector<1x128xf32>
    %88 = arith.mulf %54, %75 : vector<2x128xf32>
    %cst_20 = arith.constant dense<0.000000e+00> : vector<128xf32>
    %89 = vector.multi_reduction <add>, %88, %cst_20 [0] : vector<2x128xf32> to vector<128xf32>
    %90 = vector.shape_cast %89 : vector<128xf32> to vector<1x128xf32>
    %91 = arith.mulf %56, %75 : vector<2x128xf32>
    %cst_21 = arith.constant dense<0.000000e+00> : vector<128xf32>
    %92 = vector.multi_reduction <add>, %91, %cst_21 [0] : vector<2x128xf32> to vector<128xf32>
    %93 = vector.shape_cast %92 : vector<128xf32> to vector<1x128xf32>
    %94 = arith.mulf %58, %75 : vector<2x128xf32>
    %cst_22 = arith.constant dense<0.000000e+00> : vector<128xf32>
    %95 = vector.multi_reduction <add>, %94, %cst_22 [0] : vector<2x128xf32> to vector<128xf32>
    %96 = vector.shape_cast %95 : vector<128xf32> to vector<1x128xf32>
    %97 = arith.mulf %60, %75 : vector<2x128xf32>
    %cst_23 = arith.constant dense<0.000000e+00> : vector<128xf32>
    %98 = vector.multi_reduction <add>, %97, %cst_23 [0] : vector<2x128xf32> to vector<128xf32>
    %99 = vector.shape_cast %98 : vector<128xf32> to vector<1x128xf32>
    %100 = arith.mulf %62, %75 : vector<2x128xf32>
    %cst_24 = arith.constant dense<0.000000e+00> : vector<128xf32>
    %101 = vector.multi_reduction <add>, %100, %cst_24 [0] : vector<2x128xf32> to vector<128xf32>
    %102 = vector.shape_cast %101 : vector<128xf32> to vector<1x128xf32>
    %103 = tpu.concatenate %78, %81, %84, %87, %90, %93, %96, %99, %102 in 0 : vector<1x128xf32>, vector<1x128xf32>, vector<1x128xf32>, vector<1x128xf32>, vector<1x128xf32>, vector<1x128xf32>, vector<1x128xf32>, vector<1x128xf32>, vector<1x128xf32> -> vector<9x128xf32>
    %c0_25 = arith.constant 0 : index
    %c0_26 = arith.constant 0 : index
    %c0_27 = arith.constant 0 : index
    %c0_28 = arith.constant 0 : index
    %104 = vector.load %arg5[%c0_25, %c0_26, %c0_27, %c0_28] : memref<1x1x9x128xf32, #tpu.memory_space<vmem>>, vector<1x1x9x128xf32>
    %105 = vector.shape_cast %104 : vector<1x1x9x128xf32> to vector<9x128xf32>
    %106 = arith.addf %105, %103 : vector<9x128xf32>
    %c0_29 = arith.constant 0 : index
    %c0_30 = arith.constant 0 : index
    %c0_31 = arith.constant 0 : index
    %c0_32 = arith.constant 0 : index
    %107 = vector.load %arg5[%c0_29, %c0_30, %c0_31, %c0_32] : memref<1x1x9x128xf32, #tpu.memory_space<vmem>>, vector<1x1x9x128xf32>
    %108 = vector.shape_cast %107 : vector<1x1x9x128xf32> to vector<9x128xf32>
    %109 = vector.shape_cast %106 : vector<9x128xf32> to vector<1x1x9x128xf32>
    tpu.vector_store %arg5[%c0_29, %c0_30, %c0_31, %c0_32], %109 {strides = array<i32>} : memref<1x1x9x128xf32, #tpu.memory_space<vmem>>, vector<1x1x9x128xf32>,
    return
  }
  func.func @transform_0(%arg0: i32, %arg1: i32, %arg2: i32) -> (i32, i32, i32) {
    %c1_i32 = arith.constant 1 : i32
    %0 = arith.muli %arg0, %c1_i32 : i32
    %1 = arith.addi %0, %arg2 : i32
    %c0_i32 = arith.constant 0 : i32
    %c0_i32_0 = arith.constant 0 : i32
    return %arg1, %1, %c0_i32 : i32, i32, i32
  }
  func.func @transform_1(%arg0: i32, %arg1: i32, %arg2: i32) -> (i32, i32, i32) {
    %c1_i32 = arith.constant 1 : i32
    %0 = arith.muli %arg0, %c1_i32 : i32
    %1 = arith.addi %0, %arg2 : i32
    %c0_i32 = arith.constant 0 : i32
    %c0_i32_0 = arith.constant 0 : i32
    return %arg1, %1, %c0_i32 : i32, i32, i32
  }
  func.func @transform_2(%arg0: i32, %arg1: i32, %arg2: i32) -> (i32, i32, i32, i32) {
    %c0_i32 = arith.constant 0 : i32
    %c0_i32_0 = arith.constant 0 : i32
    %c0_i32_1 = arith.constant 0 : i32
    return %arg0, %arg1, %c0_i32, %c0_i32_0 : i32, i32, i32, i32
  }
}

</mosaic_0001>

<bundles_post_ra>
// kernel: tpu_custom_call.1
= control target key start
LH: loop header
LB: loop body
LE: loop exit
PB: predicated region body
PF: predicated region fallthrough
CT: control target
= control target key end

     0   :  { %7 = vsyncpa [#allocation3], 0  ;;  %s925_s0 = inlined_call_operand.hbm [shape: f32[2,2,128], index: 0, kind: input, shape index: {}]   ;;  %s926_s1 = inlined_call_operand.hbm [shape: f32[2,2,128], index: 1, kind: input, shape index: {}]   ;;  %s927_s2 = inlined_call_operand.vmem [shape: f32[1,2,9,128], index: 2, kind: output, shape index: {}]  }
   0x1   :  { %9 = vsyncpa [#allocation3 + $0x1], 0 }
   0x2   :  { %10 = vsyncpa [#allocation5], 0 }
   0x3   :  { %12 = vsyncpa [#allocation5 + $0x1], 0  ;;  %s767_s9 = smov 0   ;;  %s769_s10 = smov 0  }
   0x4   :  { %s771_s11 = smov 0   ;;  %s773_s12 = smov 0  }
   0x5   :  { %s775_s13 = smov 0   ;;  %s777_s14 = smov 0  }
   0x6 LB: > { %s532_s15 = sadd.s32 4294967295, %s747_s14   ;;  %s33_s16 = sadd.s32 1, %s743_s13  ;;  %s747_s14 = sphi %s777_s14, %s18_s14   ;;  %s743_s13 = sphi %s775_s13, %s936_s13   ;;  %s739_s12 = sphi %s773_s12, %s935_s12   ;;  %s735_s11 = sphi %s771_s11, %s934_s11   ;;  %s731_s10 = sphi %s769_s10, %s933_s10   ;;  %s727_s9 = sphi %s767_s9, %s932_s9  }
   0x7   : > { %p35_p0 = scmp.ge.s32.totalorder %s33_s16, 2  ;;  %s48_s17 = sadd.s32 1, %s735_s11 }
   0x8   : > { %p55_p1 = scmp.ne.s32.totalorder %s735_s11, %s731_s10  ;;  %p56_p2 = scmp.eq.s32.totalorder %s747_s14, 0 }
   0x9   : > { %s938_s16 = smov (%p35_p0, %s33_s16), 0  ;;  %p61_p4 = scmp.ne.s32.totalorder %s731_s10, %s727_s9 }
   0xa   : > { %p803_p3 = por %p56_p2, %p55_p1  ;;  %s43_s19 = ssub.s32 %s743_s13, %s938_s16 }
   0xb   : > { %p62_p5 = scmp.eq.s32.totalorder %s532_s15, 0  ;;  %p46_p6 = scmp.eq.s32.totalorder %s43_s19, 0 }
   0xc   : > { %p567_p8 = scmp.lt.s32.totalorder %s747_s14, 2  ;;  %s819_s22 = sand.u32 1, %s735_s11  }
   0xd   : > { %p810_p7 = por %p62_p5, %p61_p4  ;;  %s537_s23 = sshll.u32 %s743_s13, 5 }
   0xe   : > { %s816_s21 = scalar_select %p46_p6, %s735_s11, %s48_s17  }
   0xf   : > { %s536_s24 = sshll.u32 %s819_s22, 1  ;;  %s154_s27 = scalar_lea.hbm %s925_s0, %s537_s23 }
  0x10   : > { %s147_s28 = scalar_lea.vmem [#allocation2], %s536_s24  ;;  %p828_p9 = pnand %p567_p8, %p803_p3 }
  0x11   : > { %s156_s29 = sshll.u32 %s147_s28, 4  ;;  %p540_p10 = scmp.ge.s32.totalorder %s747_s14, 1  ;;  %s157_s29 = int_to_ptr.vmem [resolvable:$true] %s156_s29 }
  0x12   : > { %p181_p11 = scmp.lt.s32.totalorder %s747_s14, 3  ;;  %s144_s3 = scalar_lea.sflag [#allocation3], %s819_s22 }
  0x13   : > { %p639_p12 = pneg %p828_p9  ;;  %s650_s4 = scalar_lea.vmem %s157_s29, 32 }
  0x14   : > { %p651_p13 = scmp.ne.s32.totalorder %s157_s29, %s650_s4  ;;  %s749_s5 = smov [#allocation2]  }
  0x15   : > { %s655_s6 = sshll.u32 %s749_s5, 4  ;;  %s656_s6 = int_to_ptr.vmem [resolvable:$false] %s655_s6 }
  0x16   : > { %p653_p0 = pnand %p651_p13, %p639_p12  ;;  %s657_s7 = scalar_lea.vmem %s656_s6, 64 }
  0x17   : > { %p658_p2 = scmp.lt.s32.totalorder %s157_s29, %s656_s6  ;;  %p659_p3 = scmp.lt.s32.totalorder %s657_s7, %s650_s4 }
  0x18   : > { %p654_p1 = pneg %p653_p0 }
  0x19   : > { %p660_p4 = por %p659_p3, %p658_p2 }
  0x1b   : > { %p661_p5 = pnand %p660_p4, %p654_p1 }
  0x1d   : > { %664 = shalt.err (!%p661_p5)
}
  0x1e   : > { %563 = dma.hbm_to_vmem [thread:$0]  (!%p828_p9), %s154_s27, 32, %s157_s29, %s144_s3  }
  0x1f   : > { %p846_p6 = pnand %p540_p10, %p181_p11  ;;  %s174_s17 = scalar_lea.hbm %s926_s1, %s537_s23 }
  0x20   : > { %s167_s18 = scalar_lea.vmem [#allocation4], %s536_s24  ;;  %s164_s25 = scalar_lea.sflag [#allocation5], %s819_s22 }
  0x21   : > { %s176_s19 = sshll.u32 %s167_s18, 4  ;;  %s750_s27 = smov [#allocation4]   ;;  %s177_s19 = int_to_ptr.vmem [resolvable:$true] %s176_s19 }
  0x22   : > { %s678_s26 = scalar_lea.vmem %s177_s19, 32  ;;  %s683_s28 = sshll.u32 %s750_s27, 4  ;;  %s684_s28 = int_to_ptr.vmem [resolvable:$false] %s683_s28 }
  0x23   : > { %p679_p8 = scmp.ne.s32.totalorder %s177_s19, %s678_s26  ;;  %s685_s29 = scalar_lea.vmem %s684_s28, 64 }
  0x24   : > { %p686_p10 = scmp.lt.s32.totalorder %s177_s19, %s684_s28  ;;  %p687_p11 = scmp.lt.s32.totalorder %s685_s29, %s678_s26 }
  0x25   : > { %p681_p13 = pnand %p679_p8, %p639_p12 }
  0x26   : > { %p688_p1 = por %p687_p11, %p686_p10 }
  0x27   : > { %p682_p0 = pneg %p681_p13 }
  0x29   : > { %p689_p2 = pnand %p688_p1, %p682_p0 }
  0x2b   : > { %692 = shalt.err (!%p689_p2)
}
  0x2c   : > { %566 = dma.hbm_to_vmem [thread:$0]  (!%p828_p9), %s174_s17, 32, %s177_s19, %s164_s25  }
  0x2d   : > { %185 = sbr.rel (%p846_p6) target bundleno = 167 (0xa7), region = 28  ;;  %s187_s22 = sand.u32 (!%p846_p6), 1, %s731_s10  }
  0x2e   : > { %s541_s23 = sshll.u32 (!%p846_p6), %s187_s22, 1  ;;  %s188_s24 = scalar_lea.sflag (!%p846_p6), [#allocation3], %s187_s22 }
  0x2f   : > { %s191_s3 = scalar_lea.vmem (!%p846_p6), [#allocation2], %s541_s23 }
  0x32   : > { %718 = dma.done.wait (%p810_p7), %s188_s24, 32  }
  0x33   : > { %720 = vsyncadd (%p810_p7), %s188_s24, 4294967264  ;;  %s197_s4 = scalar_lea.sflag [#allocation5], %s187_s22  ;;  %s200_s5 = scalar_lea.vmem [#allocation4], %s541_s23 }
  0x34   : > { %722 = dma.done.wait (%p810_p7), %s197_s4, 32  }
  0x35   : > { %724 = vsyncadd (%p810_p7), %s197_s4, 4294967264  ;;  %p234_p9 = scmp.lt.s32.totalorder %s739_s12, 1  ;;  %v751_v0 = vmov 0.0   ;;  %v247_v1 = vld [vmem:[%s191_s3] sm:$0x3]  ;;  %vm316_vm0 = vcmask 1041408  }
  0x36   : > { %v248_v2 = vld [vmem:[%s200_s5] sm:$0x3]  ;;  %vm388_vm1 = vcmask 1040384   ;;  %vm391_vm2 = vcmask 1042432   ;;  %vm393_vm3 = vcmask 1043456   ;;  %vm395_vm4 = vcmask 1044480  }
  0x37   : > { %s940_s12 = smov (!%p234_p9, %s739_s12), 1  ;;  %v249_v3 = vsub.f32 %v247_v1, %v248_v2  ;;  %vm397_vm5 = vcmask 1045504   ;;  %vm399_vm6 = vcmask 1046528  }
  0x38   : > { %s555_s30 = sshll.u32 %s940_s12, 4 }
  0x39   : > { %s875_s8 = scalar_lea.vmem %s927_s2, %s555_s30  ;;  %v250_v4 = vmul.f32 10.0, %v249_v3 }
  0x3a   : > { %246 = vst [vmem:[%s875_s8 + $0x8] sm:$0x1] %v751_v0 }
  0x3b   : > { %v545_v5 = vadd.f32 10.0, %v250_v4  ;;  %v546_v6 = vadd.f32 7.5, %v250_v4  ;;  %v547_v7 = vadd.f32 5.0, %v250_v4  ;;  %v548_v8 = vadd.f32 2.5, %v250_v4 }
  0x3c   : > { %v549_v13 = vadd.f32 -2.5, %v250_v4  ;;  %v259_v15 = vand.u32 2147483647, %v250_v4  ;;  %v550_v16 = vadd.f32 -5.0, %v250_v4  ;;  %v551_v19 = vadd.f32 -7.5, %v250_v4 }
  0x3d   : > { %v252_v9 = vand.u32 2147483647, %v545_v5  ;;  %v254_v10 = vand.u32 2147483647, %v546_v6  ;;  %v256_v11 = vand.u32 2147483647, %v547_v7 }
  0x3e   : > { %v258_v12 = vand.u32 2147483647, %v548_v8  ;;  %v261_v18 = vand.u32 2147483647, %v549_v13  ;;  %v263_v21 = vand.u32 2147483647, %v550_v16 }
  0x3f   : > { %v268_v14 = vmin.f32 %v252_v9, %v254_v10  ;;  %v552_v22 = vadd.f32 -10.0, %v250_v4  ;;  %v265_v24 = vand.u32 2147483647, %v551_v19 }
  0x41   : > { %v269_v17 = vmin.f32 %v268_v14, %v256_v11  ;;  %v267_v26 = vand.u32 2147483647, %v552_v22 }
  0x43   : > { %v270_v20 = vmin.f32 %v269_v17, %v258_v12 }
  0x45   : > { %v271_v23 = vmin.f32 %v270_v20, %v259_v15 }
  0x47   : > { %v272_v25 = vmin.f32 %v271_v23, %v261_v18 }
  0x49   : > { %v273_v27 = vmin.f32 %v272_v25, %v263_v21 }
  0x4b   : > { %v274_v28 = vmin.f32 %v273_v27, %v265_v24 }
  0x4d   : > { %v275_v29 = vmin.f32 %v274_v28, %v267_v26 }
  0x4f   : > { %v276_v30 = vsub.f32 %v275_v29, %v252_v9  ;;  %v279_v31 = vsub.f32 %v275_v29, %v254_v10  ;;  %v282_v32 = vsub.f32 %v275_v29, %v256_v11  ;;  %v285_v33 = vsub.f32 %v275_v29, %v258_v12 }
  0x50   : > { %v288_v34 = vsub.f32 %v275_v29, %v259_v15  ;;  %v291_v39 = vsub.f32 %v275_v29, %v261_v18  ;;  %v294_v41 = vsub.f32 %v275_v29, %v263_v21  ;;  %v297_v43 = vsub.f32 %v275_v29, %v265_v24 }
  0x51   : > { %v277_v35 = vmul.f32 1.442695, %v276_v30  ;;  %v280_v36 = vmul.f32 1.442695, %v279_v31  ;;  %v283_v37 = vmul.f32 1.442695, %v282_v32  ;;  %v300_v45 = vsub.f32 %v275_v29, %v267_v26 }
  0x52   : > { %v286_v38 = vmul.f32 1.442695, %v285_v33  ;;  %v289_v40 = vmul.f32 1.442695, %v288_v34  ;;  %v292_v42 = vmul.f32 1.442695, %v291_v39 }
  0x53   : > { %617 = vpow2.f32 %v277_v35  ;;  %v295_v44 = vmul.f32 1.442695, %v294_v41  ;;  %v298_v46 = vmul.f32 1.442695, %v297_v43  ;;  %v301_v47 = vmul.f32 1.442695, %v300_v45 }
  0x54   : > { %619 = vpow2.f32 %v280_v36 }
  0x55   : > { %621 = vpow2.f32 %v283_v37 }
  0x56   : > { %623 = vpow2.f32 %v286_v38 }
  0x57   : > { %625 = vpow2.f32 %v289_v40 }
  0x58   : > { %627 = vpow2.f32 %v292_v42 }
  0x59   : > { %629 = vpow2.f32 %v295_v44 }
  0x5a   : > { %631 = vpow2.f32 %v298_v46 }
  0x5b   : > { %633 = vpow2.f32 %v301_v47 }
  0x60   : > { %v618_v48 = vpop.eup %617 }
  0x61   : > { %v620_v49 = vpop.eup %619 }
  0x62   : > { %v622_v50 = vpop.eup %621  ;;  %v303_v51 = vadd.f32 %v620_v49, %v618_v48 }
  0x63   : > { %v624_v52 = vpop.eup %623 }
  0x64   : > { %v304_v53 = vadd.f32 %v622_v50, %v303_v51  ;;  %v626_v54 = vpop.eup %625 }
  0x65   : > { %v628_v56 = vpop.eup %627 }
  0x66   : > { %v305_v55 = vadd.f32 %v624_v52, %v304_v53  ;;  %v630_v58 = vpop.eup %629 }
  0x67   : > { %v632_v60 = vpop.eup %631 }
  0x68   : > { %v306_v57 = vadd.f32 %v626_v54, %v305_v55  ;;  %v878_v62 = vpop.eup %633 }
  0x6a   : > { %v307_v59 = vadd.f32 %v628_v56, %v306_v57 }
  0x6c   : > { %v308_v61 = vadd.f32 %v630_v58, %v307_v59 }
  0x6e   : > { %v309_v63 = vadd.f32 %v632_v60, %v308_v61 }
  0x70   : > { %v310_v0 = vadd.f32 %v878_v62, %v309_v63 }
  0x72   : > { %635 = vrcp.f32 %v310_v0 }
  0x7f   : > { %v636_v1 = vpop.eup %635 }
  0x80   : > { %v312_v2 = vmul.f32 %v636_v1, %v310_v0 }
  0x82   : > { %v313_v3 = vsub.f32 2.0, %v312_v2 }
  0x84   : > { %v881_v4 = vmul.f32 %v636_v1, %v313_v3 }
  0x86   : > { %v315_v5 = vmul.f32 %v618_v48, %v881_v4  ;;  %v324_v6 = vmul.f32 %v620_v49, %v881_v4  ;;  %v332_v7 = vmul.f32 %v622_v50, %v881_v4  ;;  %v340_v8 = vmul.f32 %v624_v52, %v881_v4 }
  0x87   : > { %v348_v9 = vmul.f32 %v626_v54, %v881_v4  ;;  %v356_v10 = vmul.f32 %v628_v56, %v881_v4  ;;  %v364_v11 = vmul.f32 %v630_v58, %v881_v4  ;;  %v372_v12 = vmul.f32 %v632_v60, %v881_v4 }
  0x88   : > { %v317_v13 = vsel %vm316_vm0, %v315_v5, 0.0  ;;  %v325_v14 = vsel %vm316_vm0, %v324_v6, 0.0  ;;  %v333_v15 = vsel %vm316_vm0, %v332_v7, 0.0  ;;  %v341_v16 = vsel %vm316_vm0, %v340_v8, 0.0 }
  0x89   : > { %v318_v17 = vrot.slane %v317_v13, 4  ;;  %v326_v18 = vrot.slane %v325_v14, 4  ;;  %v334_v19 = vrot.slane %v333_v15, 4  ;;  %v342_v20 = vrot.slane %v341_v16, 4 }
  0x8a   : > { %v349_v21 = vsel %vm316_vm0, %v348_v9, 0.0  ;;  %v357_v22 = vsel %vm316_vm0, %v356_v10, 0.0  ;;  %v365_v23 = vsel %vm316_vm0, %v364_v11, 0.0  ;;  %v373_v24 = vsel %vm316_vm0, %v372_v12, 0.0 }
  0x8b   : > { %v319_v25 = vadd.f32 %v318_v17, %v317_v13  ;;  %v327_v26 = vadd.f32 %v326_v18, %v325_v14  ;;  %v335_v27 = vadd.f32 %v334_v19, %v333_v15  ;;  %v343_v28 = vadd.f32 %v342_v20, %v341_v16  ;;  %v402_v19 = vld [vmem:[%s875_s8 + $0x8] sm:$0x1] }
  0x8c   : > { %v350_v29 = vrot.slane %v349_v21, 4  ;;  %v358_v30 = vrot.slane %v357_v22, 4  ;;  %v366_v31 = vrot.slane %v365_v23, 4  ;;  %v374_v32 = vrot.slane %v373_v24, 4 }
  0x8d   : > { %v320_v33 = vrot.slane %v319_v25, 2  ;;  %v328_v34 = vrot.slane %v327_v26, 2  ;;  %v336_v35 = vrot.slane %v335_v27, 2  ;;  %v344_v36 = vrot.slane %v343_v28, 2 }
  0x8e   : > { %v351_v37 = vadd.f32 %v350_v29, %v349_v21  ;;  %v359_v38 = vadd.f32 %v358_v30, %v357_v22  ;;  %v367_v39 = vadd.f32 %v366_v31, %v365_v23  ;;  %v375_v40 = vadd.f32 %v374_v32, %v373_v24 }
  0x8f   : > { %v321_v41 = vadd.f32 %v320_v33, %v319_v25  ;;  %v329_v42 = vadd.f32 %v328_v34, %v327_v26  ;;  %v337_v43 = vadd.f32 %v336_v35, %v335_v27  ;;  %v345_v44 = vadd.f32 %v344_v36, %v343_v28 }
  0x90   : > { %v352_v45 = vrot.slane %v351_v37, 2  ;;  %v360_v46 = vrot.slane %v359_v38, 2  ;;  %v368_v47 = vrot.slane %v367_v39, 2  ;;  %v376_v48 = vrot.slane %v375_v40, 2 }
  0x91   : > { %v322_v49 = vrot.slane %v321_v41, 1  ;;  %v330_v50 = vrot.slane %v329_v42, 1  ;;  %v338_v51 = vrot.slane %v337_v43, 1  ;;  %v346_v52 = vrot.slane %v345_v44, 1 }
  0x92   : > { %v353_v53 = vadd.f32 %v352_v45, %v351_v37  ;;  %v361_v54 = vadd.f32 %v360_v46, %v359_v38  ;;  %v369_v55 = vadd.f32 %v368_v47, %v367_v39  ;;  %v377_v56 = vadd.f32 %v376_v48, %v375_v40 }
  0x93   : > { %v323_v57 = vadd.f32 %v322_v49, %v321_v41  ;;  %v331_v58 = vadd.f32 %v330_v50, %v329_v42  ;;  %v339_v59 = vadd.f32 %v338_v51, %v337_v43  ;;  %v347_v60 = vadd.f32 %v346_v52, %v345_v44 }
  0x94   : > { %v354_v61 = vrot.slane %v353_v53, 1  ;;  %v362_v63 = vrot.slane %v361_v54, 1  ;;  %v370_v0 = vrot.slane %v369_v55, 1  ;;  %v378_v1 = vrot.slane %v377_v56, 1 }
  0x95   : > { %v389_v2 = vsel %vm388_vm1, %v323_v57, %v331_v58  ;;  %v380_v3 = vmul.f32 %v878_v62, %v881_v4 }
  0x96   : > { %v355_v5 = vadd.f32 %v354_v61, %v353_v53  ;;  %v363_v6 = vadd.f32 %v362_v63, %v361_v54  ;;  %v371_v7 = vadd.f32 %v370_v0, %v369_v55  ;;  %v390_v8 = vsel %vm316_vm0, %v389_v2, %v339_v59 }
  0x97   : > { %v381_v9 = vsel %vm316_vm0, %v380_v3, 0.0  ;;  %v379_v10 = vadd.f32 %v378_v1, %v377_v56  ;;  %v392_v11 = vsel %vm391_vm2, %v390_v8, %v347_v60 }
  0x98   : > { %v382_v12 = vrot.slane %v381_v9, 4  ;;  %v394_v13 = vsel %vm393_vm3, %v392_v11, %v355_v5 }
  0x99   : > { %v396_v14 = vsel %vm395_vm4, %v394_v13, %v363_v6 }
  0x9a   : > { %v383_v62 = vadd.f32 %v382_v12, %v381_v9  ;;  %v398_v4 = vsel %vm397_vm5, %v396_v14, %v371_v7 }
  0x9b   : > { %v400_v15 = vsel %vm399_vm6, %v398_v4, %v379_v10 }
  0x9c   : > { %v384_v16 = vrot.slane %v383_v62, 2  ;;  %405 = vst [vmem:[%s875_s8] sm:$0xff] %v400_v15 }
  0x9e   : > { %v385_v17 = vadd.f32 %v384_v16, %v383_v62 }
  0xa0   : > { %v386_v18 = vrot.slane %v385_v17, 1 }
  0xa2   : > { %v387_v20 = vadd.f32 %v386_v18, %v385_v17 }
  0xa4   : > { %v404_v21 = vadd.f32 %v402_v19, %v387_v20 }
  0xa6   : > { %406 = vst [vmem:[%s875_s8 + $0x8] sm:$0x1] %v404_v21 }
  0xa7 PF: > { %s18_s14 = sadd.s32 1, %s747_s14   ;;  %s932_s9 = smov %s731_s10 }
  0xa8   : > { %p15_p7 = scmp.ge.s32.totalorder %s18_s14, 4   ;;  %s933_s10 = smov %s735_s11 }
  0xa9   : > { %s934_s11 = smov %s816_s21  ;;  %s935_s12 = smov %s743_s13 }
  0xaa   : > { %s936_s13 = smov %s938_s16  ;;  %17 = sbr.rel (!%p15_p7) target bundleno = 6 (0x6), region = 85 }
  0xaf   :  { %436 = vsyncpa [#allocation3], 1 }
  0xb0   :  { %438 = vsyncpa [#allocation3 + $0x1], 1 }
  0xb1   :  { %439 = vsyncpa [#allocation5], 1 }
  0xb2   :  { %441 = vsyncpa [#allocation5 + $0x1], 1 }

</bundles_post_ra>
